<compile_context>
chip_gen: v6e
topology: v6e:2x2x1
jax: 0.10.0
libtpu: 0.0.40
codegen_flags: <defaults>
</compile_context>

<pallas_src>
import functools
import math

import jax
import jax.numpy as jnp
from jax.experimental import pallas as pl
from jax.experimental.pallas import tpu as pltpu

LN_EPS = 1e-5  # torch.nn.LayerNorm default
_BF16 = jnp.bfloat16
_BF16_NAMES = frozenset({"wq", "wk", "wv", "wo", "w1", "w2"})


def _layer_norm(x, w, b):
    mu = jnp.mean(x, axis=-1, keepdims=True)
    var = jnp.mean(jnp.square(x - mu), axis=-1, keepdims=True)
    return (x - mu) * jax.lax.rsqrt(var + LN_EPS) * w + b


def _gelu(x):
    # TODO(synk): torch nn.GELU defaults to exact erf; the tanh approximation is used
    # because erf lowering in the Mosaic TPU backend is not guaranteed.
    return jax.nn.gelu(x, approximate=True)


def _vmem_limit_bytes(frac=0.75):
    """Generation-aware scoped-VMEM budget (~96 MiB on 128-MiB chips, ~48 MiB on v7x)."""
    try:
        cap = getattr(pltpu.get_tpu_info(), "vmem_capacity_bytes", 64 * 1024 * 1024)
    except Exception:  # pragma: no cover - conservative fallback
        cap = 64 * 1024 * 1024
    return max(32 * 1024 * 1024, min(int(cap * frac), 112 * 1024 * 1024))


def _tile_and_pad(n, target):
    """Pick a sublane-friendly tile and the padded length it divides."""
    if n <= target:
        return n, n                      # single full-axis tile, no padding
    t = max(8, (min(target, n) // 8) * 8)
    n_pad = ((n + t - 1) // t) * t
    return t, n_pad


# --------------------------------------------------------------------------------------
# Cross-attention kernel 1: per-kv-tile LayerNorm + K/V projection (hoisted out of the
# per-query-tile attention loop; bf16 K/V written to HBM).
# --------------------------------------------------------------------------------------
def _project_kv_kernel(xkv_ref, ln_w, ln_b, wk, bk, wv, bv, k_ref, v_ref):
    x = xkv_ref[0].astype(jnp.float32)                         # [TKV, Dkv]
    xn = _layer_norm(x, ln_w[...], ln_b[...]).astype(_BF16)
    k = jnp.dot(xn, wk[...], preferred_element_type=jnp.float32) + bk[...]
    v = jnp.dot(xn, wv[...], preferred_element_type=jnp.float32) + bv[...]
    k_ref[0] = k.astype(_BF16)
    v_ref[0] = v.astype(_BF16)


def _project_kv(x_kv, params, *, tkv, m_pad):
    B, M, Dkv = x_kv.shape
    x = x_kv.astype(_BF16)                # bf16 kv stream halves HBM read traffic
    if m_pad != M:
        x = jnp.pad(x, ((0, 0), (0, m_pad - M), (0, 0)))
    n_kv = m_pad // tkv
    qk_channels = params["wk"].shape[1]
    v_channels = params["wv"].shape[1]

    weights = [params["lnkv_w"], params["lnkv_b"],
               params["wk"].astype(_BF16), params["bk"],
               params["wv"].astype(_BF16), params["bv"]]

    in_specs = [pl.BlockSpec((1, tkv, Dkv), lambda b, kv: (b, kv, 0))]
    # TODO(synk): pipeline_mode=pl.Buffered(1) for these constant-index weight blocks.
    in_specs += [pl.BlockSpec(w.shape, lambda b, kv: (0, 0)) for w in weights]
    out_specs = (pl.BlockSpec((1, tkv, qk_channels), lambda b, kv: (b, kv, 0)),
                 pl.BlockSpec((1, tkv, v_channels), lambda b, kv: (b, kv, 0)))

    return pl.pallas_call(
        _project_kv_kernel,
        grid_spec=pltpu.PrefetchScalarGridSpec(
            num_scalar_prefetch=0, grid=(B, n_kv),
            in_specs=in_specs, out_specs=out_specs),
        out_shape=(jax.ShapeDtypeStruct((B, m_pad, qk_channels), _BF16),
                   jax.ShapeDtypeStruct((B, m_pad, v_channels), _BF16)),
        compiler_params=pltpu.CompilerParams(
            dimension_semantics=("parallel", "parallel"),
            vmem_limit_bytes=_vmem_limit_bytes()),
    )(x, *weights)


# --------------------------------------------------------------------------------------
# Cross-attention kernel 2: flash-style attention over precomputed bf16 K/V, fused with
# out-projection, residual and MLP.
# --------------------------------------------------------------------------------------
def _cross_attention_kernel(q_ref, k_ref, v_ref,
                            lnq_w, lnq_b, wq, bq, wo, bo,
                            ln2_w, ln2_b, w1, b1, w2, b2,
                            out_ref,
                            q_scr, acc_scr, m_scr, l_scr,
                            *, num_heads, use_query_residual, kv_valid):
    """grid = (batch, q_tile, kv_tile); kv (reduction) axis last.

    q_ref [1,TQ,Dq] f32; k_ref [1,TKV,QK] bf16; v_ref [1,TKV,V] bf16 (precomputed by
    _project_kv - the K/V LayerNorm + GEMMs are NOT redone per query tile).
    """
    kv_idx = pl.program_id(2)
    num_kv = pl.num_programs(2)

    @pl.when(kv_idx == 0)
    def _init():
        xq = q_ref[0]                                          # [TQ, Dq] f32
        qn = _layer_norm(xq, lnq_w[...], lnq_b[...])
        q = jnp.dot(qn.astype(_BF16), wq[...],
                    preferred_element_type=jnp.float32) + bq[...]
        q_scr[...] = q.astype(_BF16)
        acc_scr[...] = jnp.zeros_like(acc_scr)
        m_scr[...] = jnp.full_like(m_scr, -1e30)
        l_scr[...] = jnp.zeros_like(l_scr)

    k = k_ref[0]                                               # [TKV, QK] bf16
    v = v_ref[0]                                               # [TKV, V]  bf16
    tkv = k.shape[0]
    qk_channels = q_scr.shape[-1]
    v_channels = v.shape[-1]
    d_qk = qk_channels // num_heads
    d_v = v_channels // num_heads
    scale = 1.0 / math.sqrt(d_qk)
    q_all = q_scr[...]

    if kv_valid is not None:  # key mask for padded kv rows (static Python switch)
        col = kv_idx * tkv + jax.lax.broadcasted_iota(
            jnp.int32, (q_all.shape[0], tkv), 1)
        key_mask = col < kv_valid

    for h in range(num_heads):
        qh = q_all[:, h * d_qk:(h + 1) * d_qk]                 # [TQ, d_qk] bf16
        kh = k[:, h * d_qk:(h + 1) * d_qk]                     # [TKV, d_qk] bf16
        vh = v[:, h * d_v:(h + 1) * d_v]                       # [TKV, d_v]  bf16
        s = jax.lax.dot_general(qh, kh, (((1,), (1,)), ((), ())),
                                preferred_element_type=jnp.float32) * scale
        if kv_valid is not None:
            s = jnp.where(key_mask, s, -1e30)
        m_prev = m_scr[h]
        m_new = jnp.maximum(m_prev, jnp.max(s, axis=-1, keepdims=True))
        alpha = jnp.exp(m_prev - m_new)
        p = jnp.exp(s - m_new)                                 # [TQ, TKV] f32
        l_scr[h] = alpha * l_scr[h] + jnp.sum(p, axis=-1, keepdims=True)
        pv = jnp.dot(p.astype(_BF16), vh, preferred_element_type=jnp.float32)
        acc_scr[:, h * d_v:(h + 1) * d_v] = (
            alpha * acc_scr[:, h * d_v:(h + 1) * d_v] + pv)
        m_scr[h] = m_new

    @pl.when(kv_idx == num_kv - 1)
    def _finalize():
        for h in range(num_heads):
            # Exact softmax normalization (runs once per tile), matching torch division.
            acc_scr[:, h * d_v:(h + 1) * d_v] = (
                acc_scr[:, h * d_v:(h + 1) * d_v] / l_scr[h])
        o = acc_scr[...].astype(_BF16)                         # [TQ, V]
        attn = jnp.dot(o, wo[...], preferred_element_type=jnp.float32) + bo[...]
        xq = q_ref[0]
        x = xq + attn if use_query_residual else attn
        xn = _layer_norm(x, ln2_w[...], ln2_b[...]).astype(_BF16)
        h1 = _gelu(jnp.dot(xn, w1[...], preferred_element_type=jnp.float32)
                   + b1[...]).astype(_BF16)
        mlp = jnp.dot(h1, w2[...], preferred_element_type=jnp.float32) + b2[...]
        out_ref[0] = (x + mlp).astype(out_ref.dtype)


_CROSS_Q_WEIGHTS = ("lnq_w", "lnq_b", "wq", "bq", "wo", "bo",
                    "ln2_w", "ln2_b", "w1", "b1", "w2", "b2")


def cross_attention_block(x_q, x_kv, params, *, num_heads, use_query_residual,
                          q_tile=512, kv_tile=1024):
    B, N, Dq = x_q.shape
    _, M, _ = x_kv.shape

    TQ, N_pad = _tile_and_pad(N, q_tile)
    n_q = N_pad // TQ
    if B * n_q < 2 and N >= 16:
        # Keep >= 2 parallel grid units so both v7x TensorCores get work.
        TQ, N_pad = _tile_and_pad(N, max(8, ((N // 2) // 8) * 8))
        n_q = N_pad // TQ
    TKV, M_pad = _tile_and_pad(M, kv_tile)
    n_kv = M_pad // TKV

    k, v = _project_kv(x_kv, params, tkv=TKV, m_pad=M_pad)

    xq = x_q
    if N_pad != N:
        xq = jnp.pad(xq, ((0, 0), (0, N_pad - N), (0, 0)))

    qk_channels = params["wq"].shape[1]
    v_channels = params["wv"].shape[1]

    weights = []
    for name in _CROSS_Q_WEIGHTS:
        w = params[name]
        if name in _BF16_NAMES:
            w = w.astype(_BF16)
        weights.append(w)

    in_specs = [
        pl.BlockSpec((1, TQ, Dq), lambda b, qi, kv: (b, qi, 0)),
        pl.BlockSpec((1, TKV, qk_channels), lambda b, qi, kv: (b, kv, 0)),
        pl.BlockSpec((1, TKV, v_channels), lambda b, qi, kv: (b, kv, 0)),
    ]
    # Weights / biases / LN params: full arrays, constant block index -> resident.
    in_specs += [pl.BlockSpec(w.shape, lambda b, qi, kv: (0, 0)) for w in weights]
    out_spec = pl.BlockSpec((1, TQ, Dq), lambda b, qi, kv: (b, qi, 0))

    kernel = functools.partial(_cross_attention_kernel,
                               num_heads=num_heads,
                               use_query_residual=use_query_residual,
                               kv_valid=None if M_pad == M else M)

    out = pl.pallas_call(
        kernel,
        grid_spec=pltpu.PrefetchScalarGridSpec(
            num_scalar_prefetch=0,
            grid=(B, n_q, n_kv),
            in_specs=in_specs,
            out_specs=out_spec,
            scratch_shapes=[
                pltpu.VMEM((TQ, qk_channels), _BF16),          # projected Q (bf16)
                pltpu.VMEM((TQ, v_channels), jnp.float32),     # flash accumulator
                pltpu.VMEM((num_heads, TQ, 1), jnp.float32),   # running max
                pltpu.VMEM((num_heads, TQ, 1), jnp.float32),   # running sum
            ]),
        out_shape=jax.ShapeDtypeStruct((B, N_pad, Dq), jnp.float32),
        compiler_params=pltpu.CompilerParams(
            dimension_semantics=("parallel", "parallel", "arbitrary"),
            vmem_limit_bytes=_vmem_limit_bytes()),
    )(xq, k, v, *weights)

    if N_pad != N:
        out = out[:, :N, :]
    return out


# --------------------------------------------------------------------------------------
# Fused self-attention stack: one pallas_call for all num_blocks * num_self_attends
# layers.  Latent state lives in VMEM scratch across the layer axis; stacked per-layer
# weights are selected by the grid index (l % L_self), so the next layer's weight DMA
# overlaps this layer's compute.
# --------------------------------------------------------------------------------------
_SELF_ORDER = ("ln_w", "ln_b", "wq", "bq", "wk", "bk", "wv", "bv", "wo", "bo",
               "ln2_w", "ln2_b", "w1", "b1", "w2", "b2")


def _self_stack_kernel(z_hbm, ln_w, ln_b, wq, bq, wk, bk, wv, bv, wo, bo,
                       ln2_w, ln2_b, w1, b1, w2, b2, out_hbm,
                       z_scr, attn_scr, dma_sem, *, num_heads):
    """grid = (L_total, B); batch is the inner (fast) axis so each layer's weights are
    fetched once per layer step, not once per (layer, batch)."""
    l = pl.program_id(0)
    b = pl.program_id(1)
    num_l = pl.num_programs(0)

    @pl.when(l == 0)
    def _load():
        cp = pltpu.make_async_copy(z_hbm.at[b], z_scr.at[b], dma_sem)
        cp.start()
        cp.wait()

    x = z_scr[b]                                               # [N, C] f32
    # SelfAttention: one shared pre-norm feeds Q, K and V.
    xn = _layer_norm(x, ln_w[0], ln_b[0]).astype(_BF16)
    q = (jnp.dot(xn, wq[0], preferred_element_type=jnp.float32) + bq[0]).astype(_BF16)
    k = (jnp.dot(xn, wk[0], preferred_element_type=jnp.float32) + bk[0]).astype(_BF16)
    v = (jnp.dot(xn, wv[0], preferred_element_type=jnp.float32) + bv[0]).astype(_BF16)

    qk_channels = q.shape[-1]
    v_channels = v.shape[-1]
    d_qk = qk_channels // num_heads
    d_v = v_channels // num_heads
    scale = 1.0 / math.sqrt(d_qk)

    # Full (non-flash) attention: the latent sequence is small by construction.
    for h in range(num_heads):
        qh = q[:, h * d_qk:(h + 1) * d_qk]
        kh = k[:, h * d_qk:(h + 1) * d_qk]
        vh = v[:, h * d_v:(h + 1) * d_v]
        s = jax.lax.dot_general(qh, kh, (((1,), (1,)), ((), ())),
                                preferred_element_type=jnp.float32) * scale
        m = jnp.max(s, axis=-1, keepdims=True)
        p = jnp.exp(s - m)
        denom = jnp.sum(p, axis=-1, keepdims=True)
        pv = jnp.dot(p.astype(_BF16), vh, preferred_element_type=jnp.float32)
        attn_scr[:, h * d_v:(h + 1) * d_v] = pv / denom        # exact normalization

    attn = (jnp.dot(attn_scr[...].astype(_BF16), wo[0],
                    preferred_element_type=jnp.float32) + bo[0])
    x1 = x + attn                                              # SelfAttention residual
    xn2 = _layer_norm(x1, ln2_w[0], ln2_b[0]).astype(_BF16)
    h1 = _gelu(jnp.dot(xn2, w1[0], preferred_element_type=jnp.float32)
               + b1[0]).astype(_BF16)
    mlp = jnp.dot(h1, w2[0], preferred_element_type=jnp.float32) + b2[0]
    z_scr[b] = x1 + mlp

    @pl.when(l == num_l - 1)
    def _store():
        cp = pltpu.make_async_copy(z_scr.at[b], out_hbm.at[b], dma_sem)
        cp.start()
        cp.wait()


def self_attention_stack(z, stacked, *, num_heads, num_blocks):
    L_self = stacked["wq"].shape[0]
    L_total = num_blocks * L_self
    if L_total == 0:
        return z
    B, N, C = z.shape
    v_channels = stacked["wv"].shape[-1]

    weights = []
    for name in _SELF_ORDER:
        w = stacked[name]
        if name in _BF16_NAMES:
            w = w.astype(_BF16)
        weights.append(w)

    def _wmap(l, b, L=L_self):            # weight sharing across blocks: layer l % L
        return (l % L, 0, 0)

    in_specs = [pl.BlockSpec(memory_space=pl.ANY)]             # latent state (HBM)
    in_specs += [pl.BlockSpec((1,) + w.shape[1:], _wmap) for w in weights]

    kernel = functools.partial(_self_stack_kernel, num_heads=num_heads)

    return pl.pallas_call(
        kernel,
        grid_spec=pltpu.PrefetchScalarGridSpec(
            num_scalar_prefetch=0,
            grid=(L_total, B),
            in_specs=in_specs,
            out_specs=pl.BlockSpec(memory_space=pl.ANY),
            scratch_shapes=[
                pltpu.VMEM((B, N, C), jnp.float32),            # resident latent state
                pltpu.VMEM((N, v_channels), jnp.float32),      # per-head attention out
                pltpu.SemaphoreType.DMA(()),
            ]),
        out_shape=jax.ShapeDtypeStruct((B, N, C), jnp.float32),
        compiler_params=pltpu.CompilerParams(
            dimension_semantics=("arbitrary", "arbitrary"),
            vmem_limit_bytes=_vmem_limit_bytes()),
    )(z, *weights)


# --------------------------------------------------------------------------------------
# Parameter construction + module wrapper
# --------------------------------------------------------------------------------------
def _init_cross_params(key, q_dim, kv_dim, qk_channels, v_channels, widening, scale=0.02):
    ks = jax.random.split(key, 6)

    def w(k, i, o):
        return jax.random.normal(k, (i, o), jnp.float32) * scale

    return dict(
        lnq_w=jnp.ones((1, q_dim), jnp.float32), lnq_b=jnp.zeros((1, q_dim), jnp.float32),
        lnkv_w=jnp.ones((1, kv_dim), jnp.float32), lnkv_b=jnp.zeros((1, kv_dim), jnp.float32),
        wq=w(ks[0], q_dim, qk_channels), bq=jnp.zeros((1, qk_channels), jnp.float32),
        wk=w(ks[1], kv_dim, qk_channels), bk=jnp.zeros((1, qk_channels), jnp.float32),
        wv=w(ks[2], kv_dim, v_channels), bv=jnp.zeros((1, v_channels), jnp.float32),
        wo=w(ks[3], v_channels, q_dim), bo=jnp.zeros((1, q_dim), jnp.float32),
        ln2_w=jnp.ones((1, q_dim), jnp.float32), ln2_b=jnp.zeros((1, q_dim), jnp.float32),
        w1=w(ks[4], q_dim, widening * q_dim), b1=jnp.zeros((1, widening * q_dim), jnp.float32),
        w2=w(ks[5], widening * q_dim, q_dim), b2=jnp.zeros((1, q_dim), jnp.float32),
    )


def _init_self_params(key, dim, qk_channels, v_channels, widening, scale=0.02):
    ks = jax.random.split(key, 6)

    def w(k, i, o):
        return jax.random.normal(k, (i, o), jnp.float32) * scale

    return dict(
        ln_w=jnp.ones((1, dim), jnp.float32), ln_b=jnp.zeros((1, dim), jnp.float32),
        wq=w(ks[0], dim, qk_channels), bq=jnp.zeros((1, qk_channels), jnp.float32),
        wk=w(ks[1], dim, qk_channels), bk=jnp.zeros((1, qk_channels), jnp.float32),
        wv=w(ks[2], dim, v_channels), bv=jnp.zeros((1, v_channels), jnp.float32),
        wo=w(ks[3], v_channels, dim), bo=jnp.zeros((1, dim), jnp.float32),
        ln2_w=jnp.ones((1, dim), jnp.float32), ln2_b=jnp.zeros((1, dim), jnp.float32),
        w1=w(ks[4], dim, widening * dim), b1=jnp.zeros((1, widening * dim), jnp.float32),
        w2=w(ks[5], widening * dim, dim), b2=jnp.zeros((1, dim), jnp.float32),
    )


class PerceiverEncoderPallas:
    """Mirrors PerceiverEncoder.forward with Pallas kernels."""

    def __init__(self, key, num_input_channels, num_self_attends_per_block=6,
                 num_blocks=8, num_latents=512, num_latent_channels=1024,
                 qk_channels=None, v_channels=None, num_cross_attend_heads=1,
                 num_self_attend_heads=8, cross_attend_widening_factor=1,
                 self_attend_widening_factor=1, latent_pos_enc_init_scale=0.02,
                 cross_attention_shape_for_attn='kv', use_query_residual=True):
        assert num_latent_channels % num_self_attend_heads == 0
        assert num_latent_channels % num_cross_attend_heads == 0
        self.num_blocks = num_blocks
        self.num_cross_heads = num_cross_attend_heads
        self.num_self_heads = num_self_attend_heads
        self.use_query_residual = use_query_residual

        # Channel defaults, mirroring CrossAttention / SelfAttention behavior.
        if cross_attention_shape_for_attn == 'q':
            cross_qk = num_latent_channels
        else:  # 'kv'
            cross_qk = num_input_channels
        if qk_channels is not None:
            cross_qk = qk_channels
        cross_v = cross_qk if v_channels is None else v_channels

        self_qk = num_latent_channels if qk_channels is None else qk_channels
        self_v = self_qk if v_channels is None else v_channels

        keys = jax.random.split(key, 2 + num_self_attends_per_block)
        # TrainablePositionEncoding: [num_latents, num_latent_channels] * init_scale.
        self.latent_pos = (jax.random.normal(keys[0], (num_latents, num_latent_channels),
                                             jnp.float32) * latent_pos_enc_init_scale)
        self.cross_params = _init_cross_params(
            keys[1], num_latent_channels, num_input_channels, cross_qk, cross_v,
            cross_attend_widening_factor)
        self.self_params = [
            _init_self_params(keys[2 + i], num_latent_channels, self_qk, self_v,
                              self_attend_widening_factor)
            for i in range(num_self_attends_per_block)
        ]
        # Stack per-layer params along a leading layer axis for the fused layer-grid call.
        self.self_params_stacked = {
            name: jnp.stack([p[name] for p in self.self_params], axis=0)
            for name in _SELF_ORDER}

    def latents(self, inputs):
        B = inputs.shape[0]
        return jnp.broadcast_to(self.latent_pos[None], (B,) + self.latent_pos.shape)

    def __call__(self, inputs, latents):
        # TODO(synk): input_mask / make_cross_attention_mask path not implemented
        # (the forward default input_mask=None is what is exercised here).
        z = cross_attention_block(latents, inputs, self.cross_params,
                                  num_heads=self.num_cross_heads,
                                  use_query_residual=self.use_query_residual)
        z = self_attention_stack(z, self.self_params_stacked,
                                 num_heads=self.num_self_heads,
                                 num_blocks=self.num_blocks)
        return z


# ----------------------------- pure-JAX reference ------------------------------------
def _ref_ln(x, w, b):
    mu = x.mean(-1, keepdims=True)
    var = ((x - mu) ** 2).mean(-1, keepdims=True)
    return (x - mu) / jnp.sqrt(var + LN_EPS) * w[0] + b[0]


def _ref_mm(x, w):
    return jnp.dot(x.astype(_BF16), w.astype(_BF16),
                   preferred_element_type=jnp.float32)


def _ref_attention(q, k, v, num_heads):
    B, N, QK = q.shape
    M, V = k.shape[1], v.shape[-1]
    dqk, dv = QK // num_heads, V // num_heads
    qh = q.reshape(B, N, num_heads, dqk)
    kh = k.reshape(B, M, num_heads, dqk)
    vh = v.reshape(B, M, num_heads, dv)
    s = jnp.einsum('bnhd,bmhd->bhnm', qh, kh,
                   preferred_element_type=jnp.float32) / math.sqrt(dqk)
    m = jnp.max(s, axis=-1, keepdims=True)
    p = jnp.exp(s - m)
    l = jnp.sum(p, axis=-1, keepdims=True)
    o = jnp.einsum('bhnm,bmhd->bnhd', p.astype(_BF16), vh,
                   preferred_element_type=jnp.float32)
    o = o / jnp.swapaxes(l, 1, 2)
    return o.reshape(B, N, V)


def _ref_cross_block(x_q, x_kv, p, num_heads, use_query_residual):
    qn = _ref_ln(x_q, p['lnq_w'], p['lnq_b'])
    kv = x_kv.astype(_BF16).astype(jnp.float32)       # matches bf16 kv stream
    kvn = _ref_ln(kv, p['lnkv_w'], p['lnkv_b'])
    q = (_ref_mm(qn, p['wq']) + p['bq'][0]).astype(_BF16)
    k = (_ref_mm(kvn, p['wk']) + p['bk'][0]).astype(_BF16)
    v = (_ref_mm(kvn, p['wv']) + p['bv'][0]).astype(_BF16)
    o = _ref_attention(q, k, v, num_heads)
    attn = _ref_mm(o, p['wo']) + p['bo'][0]
    x = x_q + attn if use_query_residual else attn
    xn = _ref_ln(x, p['ln2_w'], p['ln2_b'])
    h = jax.nn.gelu(_ref_mm(xn, p['w1']) + p['b1'][0], approximate=True)
    return x + _ref_mm(h, p['w2']) + p['b2'][0]


def _ref_self_block(x, p, num_heads):
    xn = _ref_ln(x, p['ln_w'], p['ln_b'])
    q = (_ref_mm(xn, p['wq']) + p['bq'][0]).astype(_BF16)
    k = (_ref_mm(xn, p['wk']) + p['bk'][0]).astype(_BF16)
    v = (_ref_mm(xn, p['wv']) + p['bv'][0]).astype(_BF16)
    o = _ref_attention(q, k, v, num_heads)
    attn = _ref_mm(o, p['wo']) + p['bo'][0]
    x1 = x + attn
    xn2 = _ref_ln(x1, p['ln2_w'], p['ln2_b'])
    h = jax.nn.gelu(_ref_mm(xn2, p['w1']) + p['b1'][0], approximate=True)
    return x1 + _ref_mm(h, p['w2']) + p['b2'][0]


if __name__ == "__main__":
    key = jax.random.PRNGKey(0)
    k_model, k_in = jax.random.split(key)

    # Small shapes consistent with the module's forward.
    B, M, C_IN = 2, 16, 32          # inputs:  [batch, input_seq, num_input_channels]
    N_LAT, C_LAT = 8, 64            # latents: [batch, num_latents, num_latent_channels]

    enc = PerceiverEncoderPallas(
        k_model,
        num_input_channels=C_IN,
        num_self_attends_per_block=2,
        num_blocks=2,
        num_latents=N_LAT,
        num_latent_channels=C_LAT,
        num_cross_attend_heads=1,
        num_self_attend_heads=8,
        cross_attend_widening_factor=1,
        self_attend_widening_factor=1,
        cross_attention_shape_for_attn='kv',
        use_query_residual=True,
    )

    inputs = jax.random.normal(k_in, (B, M, C_IN), jnp.float32)
    latents = enc.latents(inputs)

    out = jax.block_until_ready(enc(inputs, latents))
    assert out.shape == (B, N_LAT, C_LAT)

    # Cross-check against a pure-JAX reference with the same bf16 matmul rounding.
    z_ref = _ref_cross_block(latents, inputs, enc.cross_params,
                             enc.num_cross_heads, enc.use_query_residual)
    for _ in range(enc.num_blocks):
        for p in enc.self_params:
            z_ref = _ref_self_block(z_ref, p, enc.num_self_heads)

    max_err = float(jnp.max(jnp.abs(out - z_ref)))
    denom = float(jnp.max(jnp.abs(z_ref))) + 1e-6
    assert max_err / denom < 2e-2, f"mismatch vs reference: abs={max_err}, rel={max_err/denom}"

    print("KERNEL_OK")
</pallas_src>

<mosaic_0001>
module attributes {stable_mosaic.version = 11 : i64} {
  func.func @_project_kv_kernel(%arg0: i32, %arg1: i32, %arg2: memref<1x16x32xbf16, #tpu.memory_space<vmem>>, %arg3: memref<1x32xf32, #tpu.memory_space<vmem>>, %arg4: memref<1x32xf32, #tpu.memory_space<vmem>>, %arg5: memref<32x32xbf16, #tpu.memory_space<vmem>>, %arg6: memref<1x32xf32, #tpu.memory_space<vmem>>, %arg7: memref<32x32xbf16, #tpu.memory_space<vmem>>, %arg8: memref<1x32xf32, #tpu.memory_space<vmem>>, %arg9: memref<1x16x32xbf16, #tpu.memory_space<vmem>>, %arg10: memref<1x16x32xbf16, #tpu.memory_space<vmem>>) attributes {dimension_semantics = [#tpu.dimension_semantics<parallel>, #tpu.dimension_semantics<parallel>], iteration_bounds = array<i64: 2, 1>, scalar_prefetch = 0 : i64, scratch_operands = 0 : i64, tpu.core_type = #tpu.core_type<tc>, window_params = [{transform_indices = @transform_0, window_bounds = array<i64: 1, 16, 32>}, {pipeline_mode = #tpu.pipeline_mode<synchronous>, transform_indices = @transform_1, window_bounds = array<i64: 1, 32>}, {pipeline_mode = #tpu.pipeline_mode<synchronous>, transform_indices = @transform_2, window_bounds = array<i64: 1, 32>}, {pipeline_mode = #tpu.pipeline_mode<synchronous>, transform_indices = @transform_3, window_bounds = array<i64: 32, 32>}, {pipeline_mode = #tpu.pipeline_mode<synchronous>, transform_indices = @transform_4, window_bounds = array<i64: 1, 32>}, {pipeline_mode = #tpu.pipeline_mode<synchronous>, transform_indices = @transform_5, window_bounds = array<i64: 32, 32>}, {pipeline_mode = #tpu.pipeline_mode<synchronous>, transform_indices = @transform_6, window_bounds = array<i64: 1, 32>}, {transform_indices = @transform_7, window_bounds = array<i64: 1, 16, 32>}, {transform_indices = @transform_8, window_bounds = array<i64: 1, 16, 32>}]} {
    %c0 = arith.constant 0 : index
    %c0_0 = arith.constant 0 : index
    %c0_1 = arith.constant 0 : index
    %0 = vector.load %arg2[%c0, %c0_0, %c0_1] : memref<1x16x32xbf16, #tpu.memory_space<vmem>>, vector<1x16x32xbf16>
    %1 = vector.shape_cast %0 : vector<1x16x32xbf16> to vector<16x32xbf16>
    %2 = arith.extf %1 : vector<16x32xbf16> to vector<16x32xf32>
    %c0_2 = arith.constant 0 : index
    %c0_3 = arith.constant 0 : index
    %3 = vector.load %arg3[%c0_2, %c0_3] : memref<1x32xf32, #tpu.memory_space<vmem>>, vector<1x32xf32>
    %c0_4 = arith.constant 0 : index
    %c0_5 = arith.constant 0 : index
    %4 = vector.load %arg4[%c0_4, %c0_5] : memref<1x32xf32, #tpu.memory_space<vmem>>, vector<1x32xf32>
    %cst = arith.constant dense<0.000000e+00> : vector<16xf32>
    %5 = vector.multi_reduction <add>, %2, %cst [1] : vector<16x32xf32> to vector<16xf32>
    %6 = vector.shape_cast %5 : vector<16xf32> to vector<16x1xf32>
    %cst_6 = arith.constant 3.200000e+01 : f32
    %7 = vector.broadcast %cst_6 : f32 to vector<16x1xf32>
    %8 = arith.divf %6, %7 : vector<16x1xf32>
    %9 = vector.broadcast %8 : vector<16x1xf32> to vector<16x32xf32>
    %10 = arith.subf %2, %9 : vector<16x32xf32>
    %11 = arith.mulf %10, %10 : vector<16x32xf32>
    %cst_7 = arith.constant dense<0.000000e+00> : vector<16xf32>
    %12 = vector.multi_reduction <add>, %11, %cst_7 [1] : vector<16x32xf32> to vector<16xf32>
    %13 = vector.shape_cast %12 : vector<16xf32> to vector<16x1xf32>
    %cst_8 = arith.constant 3.200000e+01 : f32
    %14 = vector.broadcast %cst_8 : f32 to vector<16x1xf32>
    %15 = arith.divf %13, %14 : vector<16x1xf32>
    %16 = vector.broadcast %8 : vector<16x1xf32> to vector<16x32xf32>
    %17 = arith.subf %2, %16 : vector<16x32xf32>
    %cst_9 = arith.constant 9.99999974E-6 : f32
    %18 = vector.broadcast %cst_9 : f32 to vector<16x1xf32>
    %19 = arith.addf %15, %18 : vector<16x1xf32>
    %20 = math.rsqrt %19 : vector<16x1xf32>
    %21 = vector.broadcast %20 : vector<16x1xf32> to vector<16x32xf32>
    %22 = arith.mulf %17, %21 : vector<16x32xf32>
    %23 = vector.broadcast %3 : vector<1x32xf32> to vector<16x32xf32>
    %24 = arith.mulf %22, %23 : vector<16x32xf32>
    %25 = vector.broadcast %4 : vector<1x32xf32> to vector<16x32xf32>
    %26 = arith.addf %24, %25 : vector<16x32xf32>
    %27 = arith.truncf %26 : vector<16x32xf32> to vector<16x32xbf16>
    %c0_10 = arith.constant 0 : index
    %c0_11 = arith.constant 0 : index
    %28 = vector.load %arg5[%c0_10, %c0_11] : memref<32x32xbf16, #tpu.memory_space<vmem>>, vector<32x32xbf16>
    %cst_12 = arith.constant dense<0.000000e+00> : vector<16x32xf32>
    %29 = tpu.matmul %27, %28, %cst_12 {dimension_numbers = #tpu.dot_dimension_numbers<[1], [0], [0], [1], [0, 0, 1, 1], [], []>} : vector<16x32xbf16>, vector<32x32xbf16>, vector<16x32xf32> -> vector<16x32xf32>
    %c0_13 = arith.constant 0 : index
    %c0_14 = arith.constant 0 : index
    %30 = vector.load %arg6[%c0_13, %c0_14] : memref<1x32xf32, #tpu.memory_space<vmem>>, vector<1x32xf32>
    %31 = vector.broadcast %30 : vector<1x32xf32> to vector<16x32xf32>
    %32 = arith.addf %29, %31 : vector<16x32xf32>
    %c0_15 = arith.constant 0 : index
    %c0_16 = arith.constant 0 : index
    %33 = vector.load %arg7[%c0_15, %c0_16] : memref<32x32xbf16, #tpu.memory_space<vmem>>, vector<32x32xbf16>
    %cst_17 = arith.constant dense<0.000000e+00> : vector<16x32xf32>
    %34 = tpu.matmul %27, %33, %cst_17 {dimension_numbers = #tpu.dot_dimension_numbers<[1], [0], [0], [1], [0, 0, 1, 1], [], []>} : vector<16x32xbf16>, vector<32x32xbf16>, vector<16x32xf32> -> vector<16x32xf32>
    %c0_18 = arith.constant 0 : index
    %c0_19 = arith.constant 0 : index
    %35 = vector.load %arg8[%c0_18, %c0_19] : memref<1x32xf32, #tpu.memory_space<vmem>>, vector<1x32xf32>
    %36 = vector.broadcast %35 : vector<1x32xf32> to vector<16x32xf32>
    %37 = arith.addf %34, %36 : vector<16x32xf32>
    %38 = arith.truncf %32 : vector<16x32xf32> to vector<16x32xbf16>
    %c0_20 = arith.constant 0 : index
    %c0_21 = arith.constant 0 : index
    %c0_22 = arith.constant 0 : index
    %39 = vector.load %arg9[%c0_20, %c0_21, %c0_22] : memref<1x16x32xbf16, #tpu.memory_space<vmem>>, vector<1x16x32xbf16>
    %40 = vector.shape_cast %39 : vector<1x16x32xbf16> to vector<16x32xbf16>
    %41 = vector.shape_cast %38 : vector<16x32xbf16> to vector<1x16x32xbf16>
    tpu.vector_store %arg9[%c0_20, %c0_21, %c0_22], %41 {strides = array<i32>} : memref<1x16x32xbf16, #tpu.memory_space<vmem>>, vector<1x16x32xbf16>,
    %42 = arith.truncf %37 : vector<16x32xf32> to vector<16x32xbf16>
    %c0_23 = arith.constant 0 : index
    %c0_24 = arith.constant 0 : index
    %c0_25 = arith.constant 0 : index
    %43 = vector.load %arg10[%c0_23, %c0_24, %c0_25] : memref<1x16x32xbf16, #tpu.memory_space<vmem>>, vector<1x16x32xbf16>
    %44 = vector.shape_cast %43 : vector<1x16x32xbf16> to vector<16x32xbf16>
    %45 = vector.shape_cast %42 : vector<16x32xbf16> to vector<1x16x32xbf16>
    tpu.vector_store %arg10[%c0_23, %c0_24, %c0_25], %45 {strides = array<i32>} : memref<1x16x32xbf16, #tpu.memory_space<vmem>>, vector<1x16x32xbf16>,
    return
  }
  func.func @transform_0(%arg0: i32, %arg1: i32) -> (i32, i32, i32) {
    %c0_i32 = arith.constant 0 : i32
    %c0_i32_0 = arith.constant 0 : i32
    return %arg0, %arg1, %c0_i32 : i32, i32, i32
  }
  func.func @transform_1(%arg0: i32, %arg1: i32) -> (i32, i32) {
    %c0_i32 = arith.constant 0 : i32
    %c0_i32_0 = arith.constant 0 : i32
    %c0_i32_1 = arith.constant 0 : i32
    return %c0_i32, %c0_i32_0 : i32, i32
  }
  func.func @transform_2(%arg0: i32, %arg1: i32) -> (i32, i32) {
    %c0_i32 = arith.constant 0 : i32
    %c0_i32_0 = arith.constant 0 : i32
    %c0_i32_1 = arith.constant 0 : i32
    return %c0_i32, %c0_i32_0 : i32, i32
  }
  func.func @transform_3(%arg0: i32, %arg1: i32) -> (i32, i32) {
    %c0_i32 = arith.constant 0 : i32
    %c0_i32_0 = arith.constant 0 : i32
    %c0_i32_1 = arith.constant 0 : i32
    return %c0_i32, %c0_i32_0 : i32, i32
  }
  func.func @transform_4(%arg0: i32, %arg1: i32) -> (i32, i32) {
    %c0_i32 = arith.constant 0 : i32
    %c0_i32_0 = arith.constant 0 : i32
    %c0_i32_1 = arith.constant 0 : i32
    return %c0_i32, %c0_i32_0 : i32, i32
  }
  func.func @transform_5(%arg0: i32, %arg1: i32) -> (i32, i32) {
    %c0_i32 = arith.constant 0 : i32
    %c0_i32_0 = arith.constant 0 : i32
    %c0_i32_1 = arith.constant 0 : i32
    return %c0_i32, %c0_i32_0 : i32, i32
  }
  func.func @transform_6(%arg0: i32, %arg1: i32) -> (i32, i32) {
    %c0_i32 = arith.constant 0 : i32
    %c0_i32_0 = arith.constant 0 : i32
    %c0_i32_1 = arith.constant 0 : i32
    return %c0_i32, %c0_i32_0 : i32, i32
  }
  func.func @transform_7(%arg0: i32, %arg1: i32) -> (i32, i32, i32) {
    %c0_i32 = arith.constant 0 : i32
    %c0_i32_0 = arith.constant 0 : i32
    return %arg0, %arg1, %c0_i32 : i32, i32, i32
  }
  func.func @transform_8(%arg0: i32, %arg1: i32) -> (i32, i32, i32) {
    %c0_i32 = arith.constant 0 : i32
    %c0_i32_0 = arith.constant 0 : i32
    return %arg0, %arg1, %c0_i32 : i32, i32, i32
  }
}

</mosaic_0001>

<bundles_post_ra>
// kernel: tpu_custom_call.1
= control target key start
LH: loop header
LB: loop body
LE: loop exit
PB: predicated region body
PF: predicated region fallthrough
CT: control target
= control target key end

     0   :  { %s1453_s0 = inlined_call_operand.hbm [shape: bf16[2,16,32], index: 0, kind: input, shape index: {}]   ;;  %s1454_s1 = inlined_call_operand.vmem [shape: f32[1,32], index: 1, kind: input, shape index: {}]   ;;  %s1455_s2 = inlined_call_operand.vmem [shape: f32[1,32], index: 2, kind: input, shape index: {}]   ;;  %s1456_s3 = inlined_call_operand.hbm [shape: bf16[32,32], index: 3, kind: input, shape index: {}]   ;;  %s1457_s4 = inlined_call_operand.vmem [shape: f32[1,32], index: 4, kind: input, shape index: {}]   ;;  %s1458_s5 = inlined_call_operand.hbm [shape: bf16[32,32], index: 5, kind: input, shape index: {}]   ;;  %s1459_s6 = inlined_call_operand.vmem [shape: f32[1,32], index: 6, kind: input, shape index: {}]   ;;  %s1460_s7 = inlined_call_operand.hbm [shape: bf16[2,16,32], index: 7, kind: output, shape index: {0}]   ;;  %s1461_s8 = inlined_call_operand.hbm [shape: bf16[2,16,32], index: 8, kind: output, shape index: {1}]  }
   0x1   :  { %1466 = sst [smem:[#allocation17_spill]] %s1456_s3 }
   0x2   :  { %1467 = sst [smem:[#allocation18_spill]] %s1458_s5 }
   0x3   :  { %14 = vsyncpa [#allocation3], 0 }
   0x4   :  { %16 = vsyncpa [#allocation3 + $0x1], 0 }
   0x5   :  { %17 = vsyncpa [#allocation6], 0 }
   0x6   :  { %18 = vsyncpa [#allocation4], 0 }
   0x7   :  { %20 = vsyncpa [#allocation4 + $0x1], 0 }
   0x8   :  { %21 = vsyncpa [#allocation10], 0 }
   0x9   :  { %23 = vsyncpa [#allocation10 + $0x1], 0  ;;  %s1195_s27 = smov 0   ;;  %s1197_s28 = smov 0  }
   0xa   :  { %s1199_s29 = smov 0   ;;  %s1201_s30 = smov 0  }
   0xb   :  { %s1203_s9 = smov 0   ;;  %s1205_s10 = smov 0  }
   0xc LB: > { %1468 = sst [smem:[#allocation15_spill]] %s1133_s9  ;;  %s771_s11 = sadd.s32 4294967295, %s1137_s10   ;;  %s1137_s10 = sphi %s1205_s10, %s29_s10   ;;  %s1133_s9 = sphi %s1203_s9, %s1485_s9   ;;  %s1129_s30 = sphi %s1201_s30, %s1484_s30   ;;  %s1125_s29 = sphi %s1199_s29, %s1488_s29   ;;  %s1121_s28 = sphi %s1197_s28, %s1487_s28   ;;  %s1117_s27 = sphi %s1195_s27, %s1486_s27  }
   0xd   : > { %s772_s12 = sadd.s32 4294967294, %s1137_s10   ;;  %p63_p0 = scmp.ne.s32.totalorder %s1121_s28, %s1117_s27 }
   0xe   : > { %p1229_p1 = scmp.eq.s32.totalorder %s771_s11, 0  ;;  %p1233_p2 = scmp.eq.s32.totalorder %s771_s11, 1 }
   0xf   : > { %p221_p3 = scmp.eq.s32.totalorder %s772_s12, 1  ;;  %p773_p5 = scmp.ge.s32.totalorder %s1137_s10, 1 }
  0x10   : > { %p1239_p4 = por %p1229_p1, %p63_p0  ;;  %p256_p7 = scmp.lt.s32.totalorder %s1137_s10, 3 }
  0x11   : > { %p1244_p6 = por %p221_p3, %p63_p0  ;;  %s1139_s18 = smov [#allocation5]  }
  0x12   : > { %p1249_p8 = pnand %p773_p5, %p256_p7  ;;  %s274_s19 = sshll.u32 %s1139_s18, 4  ;;  %s275_s19 = int_to_ptr.vmem [resolvable:$true] %s274_s19 }
  0x13   : > { %s1472_s16 = scalar_select %p1244_p6, 1, 0 }
  0x14   : > { %p855_p9 = pneg %p1249_p8  ;;  %s1140_s21 = smov [#allocation7]  }
  0x15   : > { %s290_s22 = sshll.u32 %s1140_s21, 4  ;;  %s954_s23 = scalar_lea.vmem %s275_s19, 256  ;;  %s291_s22 = int_to_ptr.vmem [resolvable:$true] %s290_s22 }
  0x16   : > { %p1258_p11 = pnand %p855_p9, %p1229_p1  ;;  %p955_p13 = scmp.ne.s32.totalorder %s275_s19, %s954_s23 }
  0x17   : > { %p962_p5 = scmp.lt.s32.totalorder %s275_s19, %s275_s19  ;;  %p963_p7 = scmp.lt.s32.totalorder %s954_s23, %s954_s23 }
  0x18   : > { %p945_p12 = pneg %p1258_p11 }
  0x19   : > { %p964_p10 = por %p963_p7, %p962_p5 }
  0x1a   : > { %p957_p0 = pnand %p955_p13, %p945_p12 }
  0x1c   : > { %p958_p3 = pneg %p957_p0 }
  0x1e   : > { %p965_p9 = pnand %p964_p10, %p958_p3 }
  0x20   : > { %968 = shalt.err (!%p965_p9)
}
  0x21   : > { %s1462_s24 = smov 64   ;;  %s1463_s25 = smov 4  }
  0x22   : > { %s1475_s3 = sld [smem:[#allocation17_spill]]  ;;  %s980_s12 = scalar_lea.vmem %s291_s22, 256 }
  0x23   : > { %p981_p13 = scmp.ne.s32.totalorder %s291_s22, %s980_s12  ;;  %p988_p10 = scmp.lt.s32.totalorder %s291_s22, %s291_s22 }
  0x24   : > { %p989_p3 = scmp.lt.s32.totalorder %s980_s12, %s980_s12 }
  0x25   : > { %p983_p0 = pnand %p981_p13, %p945_p12 }
  0x26   : > { %p990_p7 = por %p989_p3, %p988_p10 }
  0x27   : > { %p984_p5 = pneg %p983_p0 }
  0x28   : > { %858 = dma.hbm_to_vmem [thread:$0]  (!%p1258_p11), %s1475_s3, 256, %s275_s19, [#allocation6], %s1462_s24, %s1462_s24, %s1463_s25  }
  0x29   : > { %p991_p9 = pnand %p990_p7, %p984_p5 }
  0x2b   : > { %994 = shalt.err (!%p991_p9)
}
  0x2c   : > { %s1476_s5 = sld [smem:[#allocation18_spill]]  ;;  %s41_s19 = sadd.s32 1, %s1133_s9 }
  0x2d   : > { %s50_s20 = sadd.s32 1, %s1125_s29  ;;  %p43_p12 = scmp.ge.s32.totalorder %s41_s19, 2 }
  0x2e   : > { %p57_p13 = scmp.ne.s32.totalorder %s1125_s29, %s1121_s28  ;;  %p58_p0 = scmp.eq.s32.totalorder %s1137_s10, 0 }
  0x2f   : > { %p875_p5 = scmp.lt.s32.totalorder %s1137_s10, 2  ;;  %s1490_s19 = smov (%p43_p12, %s41_s19), 0 }
  0x30   : > { %1477 = sst [smem:[#allocation16_spill]] %s1490_s19  ;;  %p59_p10 = por %p58_p0, %p57_p13 }
  0x31   : > { %p1296_p3 = por %p1233_p2, %p57_p13  ;;  %s45_s26 = ssub.s32 %s1133_s9, %s1490_s19 }
  0x32   : > { %861 = dma.hbm_to_vmem [thread:$0]  (!%p1258_p11), %s1476_s5, 256, %s291_s22, [#allocation6], %s1462_s24, %s1462_s24, %s1463_s25  }
  0x33   : > { %s307_s11 = sand.u32 1, %s1125_s29   ;;  %p48_p7 = scmp.eq.s32.totalorder %s45_s26, 0 }
  0x34   : > { %s777_s22 = sshll.u32 %s307_s11, 3  ;;  %s808_s12 = sshll.u32 %s1133_s9, 7 }
  0x35   : > { %s1305_s18 = scalar_select %p48_p7, %s1125_s29, %s50_s20  }
  0x36   : > { %s319_s25 = scalar_lea.hbm %s1453_s0, %s808_s12  ;;  %s311_s3 = scalar_lea.vmem [#allocation2], %s777_s22 }
  0x37   : > { %s320_s5 = sshll.u32 %s311_s3, 4  ;;  %p1312_p11 = pnand %p875_p5, %p59_p10  ;;  %s321_s5 = int_to_ptr.vmem [resolvable:$true] %s320_s5 }
  0x38   : > { %s308_s19 = scalar_lea.sflag [#allocation3], %s307_s11  ;;  %s1008_s26 = scalar_lea.vmem %s321_s5, 128 }
  0x39   : > { %p997_p2 = pneg %p1312_p11  ;;  %p1009_p9 = scmp.ne.s32.totalorder %s321_s5, %s1008_s26 }
  0x3a   : > { %s1143_s20 = smov [#allocation2]  }
  0x3b   : > { %p1011_p12 = pnand %p1009_p9, %p997_p2  ;;  %s1013_s9 = sshll.u32 %s1143_s20, 4  ;;  %s1014_s9 = int_to_ptr.vmem [resolvable:$false] %s1013_s9 }
  0x3c   : > { %s1015_s24 = scalar_lea.vmem %s1014_s9, 256  ;;  %p1016_p0 = scmp.lt.s32.totalorder %s321_s5, %s1014_s9 }
  0x3d   : > { %p1012_p13 = pneg %p1011_p12  ;;  %p1017_p7 = scmp.lt.s32.totalorder %s1015_s24, %s1008_s26 }
  0x3f   : > { %p1018_p6 = por %p1017_p7, %p1016_p0 }
  0x41   : > { %p1019_p5 = pnand %p1018_p6, %p1012_p13 }
  0x43   : > { %1022 = shalt.err (!%p1019_p5)
}
  0x44   : > { %s1480_s3 = smov 4   ;;  %s1481_s22 = smov 64  }
  0x45   : > { %865 = dma.hbm_to_vmem [thread:$0]  (!%p1312_p11), %s319_s25, 128, %s321_s5, %s308_s19, %s1481_s22, %s1481_s22, %s1480_s3  }
  0x46   : > { %332 = sbr.rel (%p1249_p8) target bundleno = 632 (0x278), region = 48  ;;  %s1326_s11 = sand.u32 (!%p1249_p8), 1, %s1121_s28  }
  0x47   : > { %s1329_s9 = sshll.u32 (!%p1249_p8), %s1326_s11, 3  ;;  %s335_s12 = scalar_lea.sflag (!%p1249_p8), [#allocation3], %s1326_s11 }
  0x48   : > { %s338_s21 = scalar_lea.vmem (!%p1249_p8), [#allocation2], %s1329_s9 }
  0x4b   : > { %1100 = dma.done.wait (%p1239_p4), %s335_s12, 128  }
  0x4c   : > { %1102 = vsyncadd (%p1239_p4), %s335_s12, 4294967168 }
  0x4d   : > { %1104 = dma.done.wait (%p1229_p1), [#allocation6], 512  }
  0x4e   : > { %1106 = vsyncadd (%p1229_p1), [#allocation6], 4294966784  ;;  %v816_v0 = vld [vmem:[%s338_s21] sm:$0xff]   ;;  %vm394_vm0 = vcmask 261120   ;;  %v935_v15 = vld [vmem:[#allocation5 + $0x8] sm:$0xff]   ;;  %v1144_v17 = vmov 0.0  }
  0x4f   : > { %v817_v1 = vunpack.c.l.bf16 %v816_v0  ;;  %v818_v2 = vunpack.c.h.bf16 %v816_v0  ;;  %v936_v16 = vld [vmem:[#allocation7 + $0x8] sm:$0xff]   ;;  %825 = vmatprep.subr.bf16.mxu0 %v1144_v17  ;;  %833 = vmatprep.subr.bf16.mxu1 %v1144_v17  ;;  %v937_v18 = vld [vmem:[#allocation5] sm:$0xff]   ;;  %v938_v19 = vld [vmem:[#allocation7] sm:$0xff]   ;;  %vm1145_vm1 = vmmov 0   ;;  %vm578_vm2 = vcmask 257024   ;;  %s813_s20 = sshll.u32 %s1129_s30, 7 }
  0x50   : > { %826 = vmatpush3.bf16.msra.mxu0 %v935_v15  ;;  %834 = vmatpush3.bf16.msra.mxu1 %v936_v16  ;;  %v786_v28 = vld [vmem:[%s1454_s1] ss:$0 sm:$0xff]  ;;  %s376_s24 = scalar_lea.vmem [#allocation8], %s1329_s9  ;;  %s383_s22 = scalar_lea.vmem [#allocation9], %s1329_s9 }
  0x51   : > { %v395_v3 = vsel %vm394_vm0, %v817_v1, 0.0  ;;  %v398_v4 = vsel %vm394_vm0, %v818_v2, 0.0  ;;  %827 = vmatprep.subr.bf16.mxu0 %v1144_v17  ;;  %835 = vmatprep.subr.bf16.mxu1 %v1144_v17  ;;  %v787_v32 = vld [vmem:[%s1455_s2] ss:$0 sm:$0xff]  ;;  %s612_s3 = sshll.u32 %s376_s24, 4  ;;  %s630_s12 = sshll.u32 %s383_s22, 4  ;;  %s1369_s3 = int_to_ptr.vmem [resolvable:$true] %s612_s3  ;;  %s1376_s12 = int_to_ptr.vmem [resolvable:$true] %s630_s12 }
  0x52   : > { %396 = vadd.xlane.f32.xlu0 %v395_v3  ;;  %829 = vmatprep.mubr.msk.bf16.mxu0 %vm1145_vm1, %v1144_v17  ;;  %v788_v37 = vld [vmem:[%s1457_s4] ss:$0 sm:$0xff]  ;;  %s1367_s30 = scalar_lea.hbm %s1460_s7, %s813_s20  ;;  %s1374_s15 = scalar_lea.hbm %s1461_s8, %s813_s20 }
  0x53   : > { %837 = vmatprep.mubr.msk.bf16.mxu1 %vm1145_vm1, %v1144_v17  ;;  %v792_v38 = vld [vmem:[%s1459_s6] ss:$0 sm:$0xff]  ;;  %s592_s17 = scalar_lea.sflag [#allocation4], %s1326_s11  ;;  %s1023_s25 = scalar_lea.vmem %s1369_s3, 128 }
  0x54   : > { %828 = vmatpush3.bf16.msra.mxu0 %v937_v18  ;;  %836 = vmatpush3.bf16.msra.mxu1 %v938_v19  ;;  %p1024_p1 = scmp.ne.s32.totalorder %s1369_s3, %s1023_s25  ;;  %s1146_s19 = smov [#allocation8]  }
  0x55   : > { %s1027_s14 = sshll.u32 %s1146_s19, 4  ;;  %s1028_s14 = int_to_ptr.vmem [resolvable:$false] %s1027_s14 }
  0x56   : > { %399 = vadd.xlane.f32.xlu0 %v398_v4  ;;  %p1025_p4 = pnand %p1024_p1, %p1296_p3  ;;  %s1029_s26 = scalar_lea.vmem %s1028_s14, 256 }
  0x57   : > { %p1030_p8 = scmp.lt.s32.totalorder %s1369_s3, %s1028_s14  ;;  %p1031_p10 = scmp.lt.s32.totalorder %s1029_s26, %s1023_s25 }
  0x58   : > { %p1026_p6 = pneg %p1025_p4 }
  0x59   : > { %p1032_p11 = por %p1031_p10, %p1030_p8 }
  0x5b   : > { %p1033_p2 = pnand %p1032_p11, %p1026_p6 }
  0xdb   : > { %v397_v5 = vpop.xlane.xlu0 %396 }
  0xdc   : > { %v402_v6 = vmul.f32 0.03125, %v397_v5 }
  0xde   : > { %v404_v7 = vsub.f32 %v817_v1, %v402_v6 }
  0xdf   : > { %v400_v8 = vpop.xlane.xlu0 %399 }
  0xe0   : > { %v403_v9 = vmul.f32 0.03125, %v400_v8  ;;  %v406_v10 = vmul.f32 %v404_v7, %v404_v7 }
  0xe2   : > { %v405_v11 = vsub.f32 %v818_v2, %v403_v9  ;;  %v408_v12 = vsel %vm394_vm0, %v406_v10, 0.0 }
  0xe3   : > { %409 = vadd.xlane.f32.xlu1 %v408_v12 }
  0xe4   : > { %v407_v13 = vmul.f32 %v405_v11, %v405_v11 }
  0xe6   : > { %v411_v14 = vsel %vm394_vm0, %v407_v13, 0.0 }
  0xe7   : > { %412 = vadd.xlane.f32.xlu1 %v411_v14 }
 0x16c   : > { %v410_v20 = vpop.xlane.xlu1 %409 }
 0x16d   : > { %v414_v21 = vmul.f32 0.03125, %v410_v20 }
 0x16f   : > { %v416_v22 = vadd.f32 1e-05, %v414_v21 }
 0x170   : > { %v413_v23 = vpop.xlane.xlu1 %412 }
 0x171   : > { %939 = vrsqrt.f32 %v416_v22  ;;  %v415_v24 = vmul.f32 0.03125, %v413_v23 }
 0x173   : > { %v417_v25 = vadd.f32 1e-05, %v415_v24 }
 0x175   : > { %941 = vrsqrt.f32 %v417_v25 }
 0x17e   : > { %v940_v26 = vpop.eup %939 }
 0x17f   : > { %v420_v27 = vmul.f32 %v940_v26, %v404_v7 }
 0x181   : > { %v428_v31 = vmul.f32 %v786_v28, %v420_v27 }
 0x182   : > { %v942_v29 = vpop.eup %941 }
 0x183   : > { %v421_v30 = vmul.f32 %v942_v29, %v405_v11  ;;  %v436_v34 = vadd.f32 %v787_v32, %v428_v31 }
 0x185   : > { %v429_v33 = vmul.f32 %v786_v28, %v421_v30 }
 0x187   : > { %v437_v35 = vadd.f32 %v787_v32, %v429_v33 }
 0x189   : > { %v438_v36 = vpack.c.bf16 %v437_v35, %v436_v34 }
 0x18b   : > { %830 = vmatmul.mubr.msk.bf16.vlgmr.msra.gmra.mxu0 %vm394_vm0, %v438_v36  ;;  %838 = vmatmul.mubr.msk.bf16.vlgmr.msra.gmra.mxu1 %vm394_vm0, %v438_v36 }
 0x24b   : > { %v499_v39 = vpop.f32.mrf.mxu0  ;;  %v563_v40 = vpop.f32.mrf.mxu1 }
 0x24c   : > { %v500_v41 = vadd.f32 %v788_v37, %v499_v39  ;;  %v564_v42 = vadd.f32 %v792_v38, %v563_v40 }
 0x24d   : > { %v831_v43 = vpop.f32.mrf.mxu0  ;;  %v839_v44 = vpop.f32.mrf.mxu1 }
 0x24e   : > { %v809_v45 = vpack.c.bf16 %v500_v41, %v500_v41  ;;  %v811_v46 = vpack.c.bf16 %v564_v42, %v564_v42 }
 0x24f   : > { %v502_v47 = vpop.f32.mrf.mxu0  ;;  %v566_v48 = vpop.f32.mrf.mxu1 }
 0x250   : > { %579 = vst.msk [vmem:[%s376_s24] sm:$0xf] %vm578_vm2, %v809_v45  ;;  %589 = vst.msk [vmem:[%s383_s22] sm:$0xf] %vm578_vm2, %v811_v46  ;;  %v503_v49 = vadd.f32 %v788_v37, %v502_v47  ;;  %v567_v50 = vadd.f32 %v792_v38, %v566_v48 }
 0x251   : > { %v832_v51 = vpop.f32.mrf.mxu0  ;;  %v840_v52 = vpop.f32.mrf.mxu1 }
 0x252   : > { %v810_v53 = vpack.c.bf16 %v503_v49, %v503_v49  ;;  %v812_v54 = vpack.c.bf16 %v567_v50, %v567_v50 }
 0x254   : > { %580 = vst.msk [vmem:[%s376_s24 + $0x4] sm:$0xf] %vm578_vm2, %v810_v53  ;;  %590 = vst.msk [vmem:[%s383_s22 + $0x4] sm:$0xf] %vm578_vm2, %v812_v54 }
 0x255   : > { %1036 = shalt.err (!%p1033_p2)
}
 0x256   : > { %s1037_s20 = scalar_lea.hbm %s1367_s30, 128  ;;  %s1041_s21 = scalar_lea.hbm %s1460_s7, 256 }
 0x257   : > { %p1038_p9 = scmp.ne.s32.totalorder %s1367_s30, %s1037_s20  ;;  %p1042_p0 = scmp.lt.s32.totalorder %s1367_s30, %s1460_s7 }
 0x258   : > { %p1043_p7 = scmp.lt.s32.totalorder %s1041_s21, %s1037_s20 }
 0x259   : > { %p1039_p12 = pnand %p1038_p9, %p1296_p3 }
 0x25a   : > { %p1044_p5 = por %p1043_p7, %p1042_p0 }
 0x25b   : > { %p1040_p13 = pneg %p1039_p12 }
 0x25d   : > { %p1045_p1 = pnand %p1044_p5, %p1040_p13 }
 0x25f   : > { %1048 = shalt.err (!%p1045_p1)
}
 0x260   : > { %s1147_s13 = smov 64   ;;  %s1148_s25 = smov 4  }
 0x261   : > { %851 = dma.vmem_to_hbm [thread:$0]  (%p1296_p3), %s1369_s3, 128, %s1367_s30, %s592_s17, %s1147_s13, %s1147_s13, %s1148_s25  }
 0x262   : > { %s597_s19 = scalar_lea.sflag [#allocation10], %s1326_s11  ;;  %s1049_s14 = scalar_lea.vmem %s1376_s12, 128 }
 0x263   : > { %p1050_p4 = scmp.ne.s32.totalorder %s1376_s12, %s1049_s14  ;;  %s1149_s26 = smov [#allocation9]  }
 0x264   : > { %s1053_s20 = sshll.u32 %s1149_s26, 4  ;;  %s1054_s20 = int_to_ptr.vmem [resolvable:$false] %s1053_s20 }
 0x265   : > { %p1051_p6 = pnand %p1050_p4, %p1296_p3  ;;  %s1055_s24 = scalar_lea.vmem %s1054_s20, 256 }
 0x266   : > { %p1056_p10 = scmp.lt.s32.totalorder %s1376_s12, %s1054_s20  ;;  %p1057_p11 = scmp.lt.s32.totalorder %s1055_s24, %s1049_s14 }
 0x267   : > { %p1052_p8 = pneg %p1051_p6 }
 0x268   : > { %p1058_p2 = por %p1057_p11, %p1056_p10 }
 0x26a   : > { %p1059_p9 = pnand %p1058_p2, %p1052_p8 }
 0x26c   : > { %1062 = shalt.err (!%p1059_p9)
}
 0x26d   : > { %s1063_s3 = scalar_lea.hbm %s1374_s15, 128  ;;  %s1067_s17 = scalar_lea.hbm %s1461_s8, 256 }
 0x26e   : > { %p1064_p12 = scmp.ne.s32.totalorder %s1374_s15, %s1063_s3  ;;  %p1068_p7 = scmp.lt.s32.totalorder %s1374_s15, %s1461_s8 }
 0x26f   : > { %p1069_p5 = scmp.lt.s32.totalorder %s1067_s17, %s1063_s3 }
 0x270   : > { %p1065_p13 = pnand %p1064_p12, %p1296_p3 }
 0x271   : > { %p1070_p1 = por %p1069_p5, %p1068_p7 }
 0x272   : > { %p1066_p0 = pneg %p1065_p13 }
 0x274   : > { %p1071_p4 = pnand %p1070_p1, %p1066_p0 }
 0x276   : > { %1074 = shalt.err (!%p1071_p4)
}
 0x277   : > { %852 = dma.vmem_to_hbm [thread:$0]  (%p1296_p3), %s1376_s12, 128, %s1374_s15, %s597_s19, %s1147_s13, %s1147_s13, %s1148_s25  }
 0x278 PF: > { %s645_s5 = sand.u32 1, %s1117_s27   ;;  %p1482_p6 = scmp.ne.s32.totalorder %s1472_s16, 0 }
 0x279   : > { %p1483_p8 = scmp.ge.s32.totalorder %s1137_s10, 2  ;;  %s646_s9 = scalar_lea.sflag [#allocation4], %s645_s5 }
 0x27b   : > { %p867_p10 = pnand %p1483_p8, %p1482_p6 }
 0x27d   : > { %p868_p11 = pneg %p867_p10 }
 0x27f   : > { %1108 = dma.done.wait (%p868_p11), %s646_s9, 128  }
 0x280   : > { %1110 = vsyncadd (%p868_p11), %s646_s9, 4294967168  ;;  %s655_s14 = scalar_lea.sflag [#allocation10], %s645_s5 }
 0x281   : > { %1112 = dma.done.wait (%p868_p11), %s655_s14, 128  }
 0x282   : > { %1114 = vsyncadd (%p868_p11), %s655_s14, 4294967168  ;;  %s29_s10 = sadd.s32 1, %s1137_s10   ;;  %s1484_s30 = sld [smem:[#allocation15_spill]] }
 0x283   : > { %p26_p2 = scmp.ge.s32.totalorder %s29_s10, 4   ;;  %s1485_s9 = sld [smem:[#allocation16_spill]] }
 0x284   : > { %s1486_s27 = smov %s1121_s28  ;;  %s1487_s28 = smov %s1125_s29 }
 0x285   : > { %s1488_s29 = smov %s1305_s18  ;;  %28 = sbr.rel (!%p26_p2) target bundleno = 12 (0xc), region = 118 }
 0x28a   :  { %660 = vsyncpa [#allocation3], 1 }
 0x28b   :  { %662 = vsyncpa [#allocation3 + $0x1], 1 }
 0x28c   :  { %663 = vsyncpa [#allocation6], 1 }
 0x28d   :  { %664 = vsyncpa [#allocation4], 1 }
 0x28e   :  { %666 = vsyncpa [#allocation4 + $0x1], 1 }
 0x28f   :  { %667 = vsyncpa [#allocation10], 1 }
 0x290   :  { %669 = vsyncpa [#allocation10 + $0x1], 1 }

</bundles_post_ra>
